<compile_context>
chip_gen: v7x
topology: tpu7x:2x2x1
jax: 0.10.0
libtpu: 0.0.40
codegen_flags: <defaults>
</compile_context>

<pallas_src>
import functools

import jax
import jax.numpy as jnp
from jax.experimental import pallas as pl
from jax.experimental.pallas import tpu as pltpu


def _round_up(x, m):
    return ((x + m - 1) // m) * m


def _sublane_multiple(dtype):
    # Native sublane packing: 8 rows for 4-byte, 16 for 2-byte, 32 for 1-byte.
    itemsize = jnp.dtype(dtype).itemsize
    return max(8, 32 // itemsize)


def _vmem_budgets():
    """(per-block byte budget, vmem_limit_bytes) for the current TPU gen."""
    cap = 128 * 1024 * 1024
    try:
        info = pltpu.get_tpu_info()
        cap = int(getattr(info, "vmem_capacity_bytes", cap)) or cap
    except Exception:
        pass
    # ~8 MiB blocks on v5e/v6e (128 MiB VMEM), ~4 MiB on v7x (64 MiB VMEM).
    block_budget = min(8 * 1024 * 1024, cap // 16)
    vmem_limit = min(int(cap * 3 // 4), 100 * 1024 * 1024)
    return block_budget, vmem_limit


def _choose_hw_block(hw, rows, itemsize, budget_bytes):
    """Spatial block: full hw if it fits the budget, else the largest
    multiple of 128 that does (never below 128)."""
    col_bytes = rows * itemsize           # bytes per hw column of one block
    if col_bytes * hw <= budget_bytes:
        return hw
    blk = (budget_bytes // col_bytes) // 128 * 128
    blk = max(blk, 128)                   # may exceed budget for huge c; rare
    return min(blk, hw)


def _band_shift_kernel(x_ref, o_ref, *, fold, direction, aligned):
    """One grid step = the whole (n_segment, band_r, blk) channel band of one
    batch item.  Only the shifted band flows through this kernel; unchanged
    channels ride along in the aliased input/output HBM buffer."""
    T, band_r, blk = x_ref.shape
    dtype = x_ref.dtype

    if aligned:
        # fold is a multiple of the sublane packing -> aligned slice moves,
        # no per-channel select needed (band_r == fold / 2*fold exactly).
        if direction == 'left':
            if T > 1:
                o_ref[pl.ds(0, T - 1)] = x_ref[pl.ds(1, T - 1)]
            o_ref[pl.ds(T - 1, 1)] = jnp.zeros((1, band_r, blk), dtype)
        elif direction == 'right':
            if T > 1:
                o_ref[pl.ds(1, T - 1)] = x_ref[pl.ds(0, T - 1)]
            o_ref[pl.ds(0, 1)] = jnp.zeros((1, band_r, blk), dtype)
        else:  # bidirectional: [0,fold) shifts left, [fold,2*fold) shifts right
            if T > 1:
                o_ref[pl.ds(0, T - 1), pl.ds(0, fold)] = \
                    x_ref[pl.ds(1, T - 1), pl.ds(0, fold)]
                o_ref[pl.ds(1, T - 1), pl.ds(fold, fold)] = \
                    x_ref[pl.ds(0, T - 1), pl.ds(fold, fold)]
            o_ref[pl.ds(T - 1, 1), pl.ds(0, fold)] = \
                jnp.zeros((1, fold, blk), dtype)
            o_ref[pl.ds(0, 1), pl.ds(fold, fold)] = \
                jnp.zeros((1, fold, blk), dtype)
        return

    # Generic path: fold not sublane-aligned -> per-channel select with a
    # tiny (1, band_r, 1) iota mask; per-segment-range stores, no concat.
    x = x_ref[...]                                        # (T, band_r, blk)
    ch = jax.lax.broadcasted_iota(jnp.int32, (1, band_r, 1), 1)
    zero = jnp.zeros_like(x[:1])

    if direction == 'left':
        shift = ch < fold
        if T > 1:
            o_ref[pl.ds(0, T - 1)] = jnp.where(shift, x[1:], x[:-1])
        o_ref[pl.ds(T - 1, 1)] = jnp.where(shift, zero, x[T - 1:])
    elif direction == 'right':
        shift = ch < fold
        if T > 1:
            o_ref[pl.ds(1, T - 1)] = jnp.where(shift, x[:-1], x[1:])
        o_ref[pl.ds(0, 1)] = jnp.where(shift, zero, x[:1])
    else:  # bidirectional
        is_l = ch < fold
        is_r = (ch >= fold) & (ch < 2 * fold)
        if T == 1:
            o_ref[...] = jnp.where(is_l | is_r, zero, x)
        else:
            o_ref[pl.ds(0, 1)] = jnp.where(
                is_l, x[1:2], jnp.where(is_r, zero, x[:1]))
            o_ref[pl.ds(T - 1, 1)] = jnp.where(
                is_l, zero, jnp.where(is_r, x[T - 2:T - 1], x[T - 1:]))
            if T > 2:
                o_ref[pl.ds(1, T - 2)] = jnp.where(
                    is_l, x[2:], jnp.where(is_r, x[:T - 2], x[1:T - 1]))


def temporal_shift(x, n_segment=4, n_div=8, direction='left'):
    """Pallas implementation of TemporalShift.shift (forward pass).

    For maximum benefit the caller should donate `x` (it is aliased to the
    output); without donation XLA inserts a preserving copy, which is still
    correct."""
    bz, nt, h, w = x.shape
    assert nt % n_segment == 0
    c = nt // n_segment
    fold = c // n_div                     # truncates, like PyTorch
    hw = h * w

    if fold == 0:
        # No channels shift; PyTorch copies x through unchanged.
        return x

    band = fold if direction in ('left', 'right') else 2 * fold
    sub = _sublane_multiple(x.dtype)
    band_r = min(_round_up(band, sub), c)          # legal sublane multiple or c
    aligned = (fold % sub == 0) and (band_r == band)

    itemsize = jnp.dtype(x.dtype).itemsize
    block_budget, vmem_limit = _vmem_budgets()

    # Contiguous (free) reshape: channels -> sublanes, spatial -> lanes.
    xr = x.reshape(bz, n_segment, c, hw)

    blk = _choose_hw_block(hw, n_segment * band_r, itemsize, block_budget)
    grid_hw = pl.cdiv(hw, blk)

    # Give v7x's second TensorCore work when bz == 1 and hw fits one block.
    if bz * grid_hw < 2 and hw >= 256:
        blk = _round_up(pl.cdiv(hw, 2), 128)
        if blk >= hw:
            blk = max(128, blk - 128)
        grid_hw = pl.cdiv(hw, blk)

    kernel = functools.partial(_band_shift_kernel, fold=fold,
                               direction=direction, aligned=aligned)

    band_bytes = 2 * bz * n_segment * band_r * hw * itemsize
    out = pl.pallas_call(
        kernel,
        out_shape=jax.ShapeDtypeStruct(xr.shape, xr.dtype),
        grid=(bz, grid_hw),
        in_specs=[
            # One block spans ALL segments and only the (rounded) shifted
            # channel band of one batch item.
            pl.BlockSpec((None, n_segment, band_r, blk),
                         lambda b, s: (b, 0, 0, s)),
        ],
        out_specs=pl.BlockSpec((None, n_segment, band_r, blk),
                               lambda b, s: (b, 0, 0, s)),
        input_output_aliases={0: 0},        # unchanged channels never move
        compiler_params=pltpu.CompilerParams(
            dimension_semantics=("parallel", "parallel"),
            vmem_limit_bytes=vmem_limit),
        cost_estimate=pl.CostEstimate(
            flops=bz * n_segment * band_r * hw,
            transcendentals=0,
            bytes_accessed=band_bytes),
    )(xr)

    return out.reshape(bz, nt, h, w)


def temporal_shift_ref(x, n_segment=4, n_div=8, direction='left'):
    """Pure-JAX reference matching the PyTorch code exactly."""
    bz, nt, h, w = x.shape
    c = nt // n_segment
    fold = c // n_div
    xr = x.reshape(bz, n_segment, c, h, w)
    out = jnp.zeros_like(xr)
    if direction == 'left':
        out = out.at[:, :-1, :fold].set(xr[:, 1:, :fold])
        out = out.at[:, :, fold:].set(xr[:, :, fold:])
    elif direction == 'right':
        out = out.at[:, 1:, :fold].set(xr[:, :-1, :fold])
        out = out.at[:, :, fold:].set(xr[:, :, fold:])
    else:
        out = out.at[:, :-1, :fold].set(xr[:, 1:, :fold])
        out = out.at[:, 1:, fold:2 * fold].set(xr[:, :-1, fold:2 * fold])
        out = out.at[:, :, 2 * fold:].set(xr[:, :, 2 * fold:])
    return out.reshape(bz, nt, h, w)


if __name__ == "__main__":
    # TemporalShift has no learned parameters; only the input tensor matters.
    key = jax.random.PRNGKey(0)
    ok = True
    configs = [
        # (bz, n_segment, c, h, w, n_div, dtype)
        (2, 4, 16, 16, 16, 8, jnp.float32),   # fold=2 -> unaligned select path
        (2, 4, 16, 7, 7, 2, jnp.float32),     # fold=8 -> aligned path, hw=49
        (1, 4, 32, 16, 16, 8, jnp.bfloat16),  # bf16 packing, bz=1 grid split
    ]
    for ci, (bz, n_segment, c, h, w, n_div, dtype) in enumerate(configs):
        key, sk = jax.random.split(key)
        nt = n_segment * c
        x = jax.random.normal(sk, (bz, nt, h, w), dtype=dtype)
        for direction in ('left', 'right', 'bidirectional'):
            y = jax.block_until_ready(
                temporal_shift(x, n_segment=n_segment, n_div=n_div,
                               direction=direction))
            y_ref = temporal_shift_ref(x, n_segment=n_segment, n_div=n_div,
                                       direction=direction)
            if not jnp.array_equal(y, y_ref):
                ok = False
                print(f"MISMATCH cfg={ci} direction={direction}")
    if ok:
        print("KERNEL_OK")
</pallas_src>

<mosaic_0001>
module attributes {stable_mosaic.version = 11 : i64} {
  func.func @_band_shift_kernel(%arg0: i32, %arg1: i32, %arg2: memref<1x4x8x256xf32, #tpu.memory_space<vmem>>, %arg3: memref<1x4x8x256xf32, #tpu.memory_space<vmem>>) attributes {dimension_semantics = [#tpu.dimension_semantics<parallel>, #tpu.dimension_semantics<parallel>], iteration_bounds = array<i64: 2, 1>, scalar_prefetch = 0 : i64, scratch_operands = 0 : i64, tpu.core_type = #tpu.core_type<tc>, window_params = [{transform_indices = @transform_0, window_bounds = array<i64: 1, 4, 8, 256>}, {transform_indices = @transform_1, window_bounds = array<i64: 1, 4, 8, 256>}]} {
    %c0 = arith.constant 0 : index
    %c0_0 = arith.constant 0 : index
    %c0_1 = arith.constant 0 : index
    %c0_2 = arith.constant 0 : index
    %0 = vector.load %arg2[%c0, %c0_0, %c0_1, %c0_2] : memref<1x4x8x256xf32, #tpu.memory_space<vmem>>, vector<1x4x8x256xf32>
    %1 = vector.shape_cast %0 : vector<1x4x8x256xf32> to vector<4x8x256xf32>
    %2 = tpu.iota {dimensions = array<i32: 1>} : vector<1x8x1xi32>
    %cst = arith.constant 0.000000e+00 : f32
    %3 = vector.broadcast %cst : f32 to vector<1x8x256xf32>
    %c2_i32 = arith.constant 2 : i32
    %4 = vector.broadcast %c2_i32 : i32 to vector<1x8x1xi32>
    %5 = arith.cmpi slt, %2, %4 : vector<1x8x1xi32>
    %6 = vector.extract_strided_slice %1 {offsets = [1, 0, 0], sizes = [3, 8, 256], strides = [1, 1, 1]} : vector<4x8x256xf32> to vector<3x8x256xf32>
    %7 = vector.extract_strided_slice %1 {offsets = [0, 0, 0], sizes = [3, 8, 256], strides = [1, 1, 1]} : vector<4x8x256xf32> to vector<3x8x256xf32>
    %8 = vector.shape_cast %5 : vector<1x8x1xi1> to vector<1x8x1xi1>
    %9 = vector.broadcast %8 : vector<1x8x1xi1> to vector<3x8x256xi1>
    %10 = arith.select %9, %6, %7 : vector<3x8x256xi1>, vector<3x8x256xf32>
    %c0_3 = arith.constant 0 : index
    %c0_4 = arith.constant 0 : index
    %c0_5 = arith.constant 0 : index
    %c0_6 = arith.constant 0 : index
    %11 = vector.load %arg3[%c0_3, %c0_4, %c0_5, %c0_6] : memref<1x4x8x256xf32, #tpu.memory_space<vmem>>, vector<1x3x8x256xf32>
    %12 = vector.shape_cast %11 : vector<1x3x8x256xf32> to vector<3x8x256xf32>
    %13 = vector.shape_cast %10 : vector<3x8x256xf32> to vector<1x3x8x256xf32>
    tpu.vector_store %arg3[%c0_3, %c0_4, %c0_5, %c0_6], %13 {strides = array<i32>} : memref<1x4x8x256xf32, #tpu.memory_space<vmem>>, vector<1x3x8x256xf32>,
    %14 = vector.extract_strided_slice %1 {offsets = [3, 0, 0], sizes = [1, 8, 256], strides = [1, 1, 1]} : vector<4x8x256xf32> to vector<1x8x256xf32>
    %15 = vector.shape_cast %5 : vector<1x8x1xi1> to vector<1x8x1xi1>
    %16 = vector.broadcast %15 : vector<1x8x1xi1> to vector<1x8x256xi1>
    %17 = arith.select %16, %3, %14 : vector<1x8x256xi1>, vector<1x8x256xf32>
    %c0_7 = arith.constant 0 : index
    %c3 = arith.constant 3 : index
    %c0_8 = arith.constant 0 : index
    %c0_9 = arith.constant 0 : index
    %18 = vector.load %arg3[%c0_7, %c3, %c0_8, %c0_9] : memref<1x4x8x256xf32, #tpu.memory_space<vmem>>, vector<1x1x8x256xf32>
    %19 = vector.shape_cast %18 : vector<1x1x8x256xf32> to vector<1x8x256xf32>
    %20 = vector.shape_cast %17 : vector<1x8x256xf32> to vector<1x1x8x256xf32>
    tpu.vector_store %arg3[%c0_7, %c3, %c0_8, %c0_9], %20 {strides = array<i32>} : memref<1x4x8x256xf32, #tpu.memory_space<vmem>>, vector<1x1x8x256xf32>,
    return
  }
  func.func @transform_0(%arg0: i32, %arg1: i32) -> (i32, i32, i32, i32) {
    %c0_i32 = arith.constant 0 : i32
    %c0_i32_0 = arith.constant 0 : i32
    %c0_i32_1 = arith.constant 0 : i32
    return %arg0, %c0_i32, %c0_i32_0, %arg1 : i32, i32, i32, i32
  }
  func.func @transform_1(%arg0: i32, %arg1: i32) -> (i32, i32, i32, i32) {
    %c0_i32 = arith.constant 0 : i32
    %c0_i32_0 = arith.constant 0 : i32
    %c0_i32_1 = arith.constant 0 : i32
    return %arg0, %c0_i32, %c0_i32_0, %arg1 : i32, i32, i32, i32
  }
}

</mosaic_0001>

<bundles_post_ra>
// kernel: tpu_custom_call.1
= control target key start
LH: loop header
LB: loop body
LE: loop exit
PB: predicated region body
PF: predicated region fallthrough
CT: control target
= control target key end

     0   :  { %6 = vsyncpa [#allocation3], 0  ;;  %s688_s0 = inlined_call_operand.hbm [shape: f32[2,4,16,256], index: 0, kind: input, shape index: {}, may-alias: {0,1}]   ;;  %s689_s1 = inlined_call_operand.hbm [shape: f32[2,4,16,256], index: 1, kind: output, shape index: {}, may-alias: {0,1}]  }
   0x1   :  { %8 = vsyncpa [#allocation3 + $0x1], 0 }
   0x2   :  { %9 = vsyncpa [#allocation4], 0 }
   0x3   :  { %11 = vsyncpa [#allocation4 + $0x1], 0  ;;  %s507_s6 = smov 0   ;;  %s509_s7 = smov 0  }
   0x4   :  { %s511_s8 = smov 0   ;;  %s513_s9 = smov 0  }
   0x5   :  { %s515_s10 = smov 0   ;;  %s517_s11 = smov 0  }
   0x6 LB: > { %s288_s12 = sadd.s32 4294967295, %s487_s11   ;;  %s289_s13 = sadd.s32 4294967294, %s487_s11   ;;  %s487_s11 = sphi %s517_s11, %s17_s11   ;;  %s483_s10 = sphi %s515_s10, %s703_s10   ;;  %s479_s9 = sphi %s513_s9, %s702_s9   ;;  %s475_s8 = sphi %s511_s8, %s701_s8   ;;  %s471_s7 = sphi %s509_s7, %s700_s7   ;;  %s467_s6 = sphi %s507_s6, %s699_s6  }
   0x7   : > { %s29_s14 = sadd.s32 1, %s483_s10  ;;  %s38_s15 = sadd.s32 1, %s475_s8 }
   0x8   : > { %p31_p0 = scmp.ge.s32.totalorder %s29_s14, 2  ;;  %p45_p1 = scmp.ne.s32.totalorder %s475_s8, %s471_s7 }
   0x9   : > { %p46_p2 = scmp.eq.s32.totalorder %s487_s11, 0  ;;  %p51_p3 = scmp.ne.s32.totalorder %s471_s7, %s467_s6 }
   0xa   : > { %s705_s14 = smov (%p31_p0, %s29_s14), 0  ;;  %p52_p5 = scmp.eq.s32.totalorder %s288_s12, 0 }
   0xb   : > { %p548_p4 = por %p46_p2, %p45_p1  ;;  %s33_s17 = ssub.s32 %s483_s10, %s705_s14 }
   0xc   : > { %p77_p6 = scmp.eq.s32.totalorder %s288_s12, 1  ;;  %p36_p7 = scmp.eq.s32.totalorder %s33_s17, 0 }
   0xd   : > { %p554_p8 = por %p52_p5, %p51_p3  ;;  %p83_p10 = scmp.eq.s32.totalorder %s289_s13, 1 }
   0xe   : > { %p558_p9 = por %p77_p6, %p45_p1  ;;  %p319_p13 = scmp.lt.s32.totalorder %s487_s11, 2 }
   0xf   : > { %s563_s20 = scalar_select %p36_p7, %s475_s8, %s38_s15  }
  0x10   : > { %s693_s19 = scalar_select %p558_p9, 1, 0 }
  0x11   : > { %p565_p11 = por %p83_p10, %p51_p3  ;;  %s103_s22 = sand.u32 1, %s475_s8  }
  0x12   : > { %s292_s23 = sshll.u32 %s103_s22, 6  ;;  %s305_s24 = sshll.u32 %s483_s10, 11 }
  0x13   : > { %s694_s21 = scalar_select %p565_p11, 1, 0 }
  0x14   : > { %s576_s27 = scalar_lea.hbm %s688_s0, %s305_s24  ;;  %s107_s28 = scalar_lea.vmem [#allocation2], %s292_s23 }
  0x15   : > { %s116_s29 = sshll.u32 %s107_s28, 4  ;;  %p582_p0 = pnand %p319_p13, %p548_p4  ;;  %s578_s29 = int_to_ptr.vmem [resolvable:$true] %s116_s29 }
  0x16   : > { %s586_s2 = scalar_lea.sflag [#allocation3], %s103_s22  ;;  %s375_s3 = scalar_lea.hbm %s576_s27, 1024 }
  0x17   : > { %p376_p1 = scmp.ne.s32.totalorder %s576_s27, %s375_s3  ;;  %p377_p2 = pneg %p582_p0 }
  0x18   : > { %s380_s12 = scalar_lea.hbm %s688_s0, 4096  ;;  %p381_p4 = scmp.lt.u32.totalorder %s576_s27, %s688_s0 }
  0x19   : > { %p378_p3 = pnand %p377_p2, %p376_p1  ;;  %p382_p6 = scmp.lt.u32.totalorder %s380_s12, %s375_s3 }
  0x1a   : > { %p384_p10 = scmp.lt.u32.totalorder %s375_s3, %s576_s27 }
  0x1b   : > { %p379_p5 = pneg %p378_p3  ;;  %p383_p7 = por %p382_p6, %p381_p4 }
  0x1d   : > { %p385_p13 = por %p384_p10, %p383_p7 }
  0x1f   : > { %p386_p12 = pnand %p385_p13, %p379_p5 }
  0x21   : > { %389 = shalt.err (!%p386_p12)
}
  0x22   : > { %s390_s16 = scalar_lea.vmem %s578_s29, 1024  ;;  %s489_s17 = smov [#allocation2]  }
  0x23   : > { %p391_p1 = scmp.ne.s32.totalorder %s578_s29, %s390_s16  ;;  %s395_s22 = sshll.u32 %s489_s17, 4  ;;  %s396_s22 = int_to_ptr.vmem [resolvable:$false] %s395_s22 }
  0x24   : > { %s397_s23 = scalar_lea.vmem %s396_s22, 2048  ;;  %p398_p9 = scmp.lt.s32.totalorder %s578_s29, %s396_s22 }
  0x25   : > { %p393_p3 = pnand %p391_p1, %p377_p2  ;;  %p399_p4 = scmp.lt.s32.totalorder %s397_s23, %s390_s16 }
  0x27   : > { %p394_p11 = pneg %p393_p3  ;;  %p400_p6 = por %p399_p4, %p398_p9 }
  0x29   : > { %p401_p7 = pnand %p400_p6, %p394_p11 }
  0x2b   : > { %404 = shalt.err (!%p401_p7)
}
  0x2c   : > { %s490_s24 = smov 512   ;;  %s491_s25 = smov 256  }
  0x2d   : > { %s492_s26 = smov 16   ;;  %p295_p12 = scmp.ge.s32.totalorder %s487_s11, 1 }
  0x2e   : > { %314 = dma.hbm_to_vmem [thread:$0]  (!%p582_p0), %s576_s27, 1024, %s578_s29, %s586_s2, %s490_s24, %s491_s25, %s492_s26  }
  0x2f   : > { %p124_p2 = scmp.lt.s32.totalorder %s487_s11, 3 }
  0x31   : > { %p125_p5 = pnand %p295_p12, %p124_p2 }
  0x32   : > { %s617_s28 = sand.u32 (!%p125_p5), 1, %s471_s7  }
  0x33   : > { %128 = sbr.rel (%p125_p5) target bundleno = 87 (0x57), region = 24  ;;  %s296_s3 = sshll.u32 (!%p125_p5), %s617_s28, 6 }
  0x34   : > { %s131_s4 = scalar_lea.sflag (!%p125_p5), [#allocation3], %s617_s28  ;;  %s134_s5 = scalar_lea.vmem (!%p125_p5), [#allocation2], %s296_s3 }
  0x3a   : > { %458 = dma.done.wait (%p554_p8), %s131_s4, 1024  }
  0x3b   : > { %460 = vsyncadd (%p554_p8), %s131_s4, 4294966272  ;;  %v163_v0 = vlaneseq  ;;  %s152_s27 = scalar_lea.vmem [#allocation5], %s296_s3  ;;  %s306_s30 = sshll.u32 %s479_s9, 11  ;;  %v155_v2 = vld [vmem:[%s134_s5] sm:$0xff]  ;;  %v157_v3 = vld [vmem:[%s134_s5 + $0x10] sm:$0xff] }
  0x3c   : > { %s201_s29 = sshll.u32 %s152_s27, 4  ;;  %v156_v4 = vld [vmem:[%s134_s5 + $0x8] sm:$0xff]  ;;  %v158_v6 = vld [vmem:[%s134_s5 + $0x18] sm:$0xff]  ;;  %v159_v7 = vld [vmem:[%s134_s5 + $0x20] sm:$0xff]  ;;  %s632_s12 = scalar_lea.hbm %s689_s1, %s306_s30  ;;  %s626_s29 = int_to_ptr.vmem [resolvable:$true] %s201_s29 }
  0x3d   : > { %v164_v1 = vshrl.u32 %v163_v0, 7  ;;  %v160_v8 = vld [vmem:[%s134_s5 + $0x28] sm:$0xff]  ;;  %v161_v12 = vld [vmem:[%s134_s5 + $0x30] sm:$0xff]  ;;  %v162_v13 = vld [vmem:[%s134_s5 + $0x38] sm:$0xff]  ;;  %s186_s9 = scalar_lea.sflag [#allocation4], %s617_s28  ;;  %s405_s13 = scalar_lea.vmem %s626_s29, 1024 }
  0x3e   : > { %p406_p8 = scmp.ne.s32.totalorder %s626_s29, %s405_s13  ;;  %p696_p9 = scmp.ne.s32.totalorder %s693_s19, 0 }
  0x3f   : > { %vm165_vm0 = vcmp.lt.s32.totalorder %v164_v1, 2  ;;  %s493_s15 = smov [#allocation5]  }
  0x40   : > { %v168_v5 = vsel %vm165_vm0, %v157_v3, %v155_v2  ;;  %v169_v9 = vsel %vm165_vm0, %v158_v6, %v156_v4  ;;  %v170_v10 = vsel %vm165_vm0, %v159_v7, %v157_v3  ;;  %v171_v11 = vsel %vm165_vm0, %v160_v8, %v158_v6  ;;  %p407_p11 = pnand %p406_p8, %p696_p9  ;;  %s409_s16 = sshll.u32 %s493_s15, 4  ;;  %s410_s16 = int_to_ptr.vmem [resolvable:$false] %s409_s16 }
  0x41   : > { %174 = vst [vmem:[%s152_s27] sm:$0xff] %v168_v5  ;;  %175 = vst [vmem:[%s152_s27 + $0x8] sm:$0xff] %v169_v9  ;;  %v172_v14 = vsel %vm165_vm0, %v161_v12, %v159_v7  ;;  %v173_v15 = vsel %vm165_vm0, %v162_v13, %v160_v8  ;;  %v180_v16 = vsel %vm165_vm0, 0.0, %v161_v12  ;;  %v181_v17 = vsel %vm165_vm0, 0.0, %v162_v13  ;;  %s411_s17 = scalar_lea.vmem %s410_s16, 2048  ;;  %p412_p10 = scmp.lt.s32.totalorder %s626_s29, %s410_s16 }
  0x42   : > { %176 = vst [vmem:[%s152_s27 + $0x10] sm:$0xff] %v170_v10  ;;  %177 = vst [vmem:[%s152_s27 + $0x18] sm:$0xff] %v171_v11  ;;  %p408_p0 = pneg %p407_p11  ;;  %p413_p13 = scmp.lt.s32.totalorder %s411_s17, %s405_s13 }
  0x43   : > { %178 = vst [vmem:[%s152_s27 + $0x20] sm:$0xff] %v172_v14  ;;  %179 = vst [vmem:[%s152_s27 + $0x28] sm:$0xff] %v173_v15 }
  0x44   : > { %298 = vst [vmem:[%s152_s27 + $0x30] sm:$0xff] %v180_v16  ;;  %299 = vst [vmem:[%s152_s27 + $0x38] sm:$0xff] %v181_v17  ;;  %p414_p1 = por %p413_p13, %p412_p10 }
  0x46   : > { %p415_p3 = pnand %p414_p1, %p408_p0 }
  0x48   : > { %418 = shalt.err (!%p415_p3)
}
  0x49   : > { %s419_s22 = scalar_lea.hbm %s632_s12, 1024  ;;  %s423_s25 = scalar_lea.hbm %s689_s1, 4096 }
  0x4a   : > { %p420_p4 = scmp.ne.s32.totalorder %s632_s12, %s419_s22  ;;  %p424_p12 = scmp.lt.u32.totalorder %s632_s12, %s689_s1 }
  0x4b   : > { %p425_p2 = scmp.lt.u32.totalorder %s423_s25, %s419_s22  ;;  %p427_p8 = scmp.lt.u32.totalorder %s419_s22, %s632_s12 }
  0x4c   : > { %p421_p6 = pnand %p420_p4, %p696_p9 }
  0x4d   : > { %p426_p5 = por %p425_p2, %p424_p12 }
  0x4e   : > { %p422_p7 = pneg %p421_p6 }
  0x4f   : > { %p428_p11 = por %p427_p8, %p426_p5 }
  0x51   : > { %p429_p0 = pnand %p428_p11, %p422_p7 }
  0x53   : > { %432 = shalt.err (!%p429_p0)
}
  0x54   : > { %s494_s4 = smov 256   ;;  %s495_s5 = smov 512  }
  0x55   : > { %s496_s27 = smov 16  }
  0x56   : > { %309 = dma.vmem_to_hbm [thread:$0]  (%p696_p9), %s626_s29, 1024, %s632_s12, %s186_s9, %s494_s4, %s495_s5, %s496_s27  }
  0x57 PF: > { %s216_s30 = sand.u32 1, %s467_s6   ;;  %p697_p10 = scmp.ne.s32.totalorder %s694_s21, 0 }
  0x58   : > { %p698_p13 = scmp.ge.s32.totalorder %s487_s11, 2  ;;  %s217_s2 = scalar_lea.sflag [#allocation4], %s216_s30 }
  0x5a   : > { %p316_p1 = pnand %p698_p13, %p697_p10 }
  0x5c   : > { %462 = dma.done.wait (!%p316_p1), %s217_s2, 1024  }
  0x5d   : > { %464 = vsyncadd (!%p316_p1), %s217_s2, 4294966272  ;;  %s17_s11 = sadd.s32 1, %s487_s11   ;;  %s699_s6 = smov %s471_s7 }
  0x5e   : > { %p14_p3 = scmp.ge.s32.totalorder %s17_s11, 4   ;;  %s700_s7 = smov %s475_s8 }
  0x5f   : > { %s701_s8 = smov %s563_s20  ;;  %s702_s9 = smov %s483_s10 }
  0x60   : > { %s703_s10 = smov %s705_s14  ;;  %16 = sbr.rel (!%p14_p3) target bundleno = 6 (0x6), region = 70 }
  0x67   :  { %222 = vsyncpa [#allocation3], 1 }
  0x68   :  { %224 = vsyncpa [#allocation3 + $0x1], 1 }
  0x69   :  { %225 = vsyncpa [#allocation4], 1 }
  0x6a   :  { %227 = vsyncpa [#allocation4 + $0x1], 1 }

</bundles_post_ra>
